<compile_context>
chip_gen: v5e
topology: v5e:2x2
jax: 0.10.0
libtpu: 0.0.40
codegen_flags: <defaults>
</compile_context>

<pallas_src>
import functools

import jax
import jax.numpy as jnp
from jax.experimental import pallas as pl
from jax.experimental.pallas import tpu as pltpu


def _round_up(n, m):
    return ((n + m - 1) // m) * m


_VMEM_BUDGET = 44 * 1024 * 1024  # stay well under v7x's 64 MiB physical VMEM


def _mlp_kernel(x_ref, w1_ref, b1_ref, w2_ref, b2_ref, o_ref):
    # x_ref : (TM, D_in)      f32  (cast to bf16 here, on the VPU)
    # w1_ref: (D_in, H_pad)   bf16   b1_ref: (1, H_pad) f32
    # w2_ref: (H_pad, TN)     bf16   b2_ref: (1, TN)    f32
    # o_ref : (TM, TN)        f32
    x = x_ref[...].astype(jnp.bfloat16)

    # fc1: bf16 MXU matmul, f32 accumulate; bias + ReLU epilogue in f32 (VPU).
    h = jnp.dot(x, w1_ref[...], preferred_element_type=jnp.float32)
    h = jnp.maximum(h + b1_ref[...], 0.0)

    # fc2: back to bf16 for the MXU, accumulate f32, add bias, store lane-dense.
    out = jnp.dot(h.astype(jnp.bfloat16), w2_ref[...],
                  preferred_element_type=jnp.float32)
    o_ref[...] = (out + b2_ref[...]).astype(o_ref.dtype)


def prepare_params(w1, b1, w2, b2, *, param_dtype=jnp.bfloat16):
    """One-time parameter prep (do NOT call per forward).

    Zero-pads the hidden / output dims up to a multiple of 128 (lane-dense
    matmul N dims and unmasked output stores) and casts weights to bf16 for
    the MXU. Padding is mathematically inert: padded w1 columns + zero bias ->
    relu(0)=0 hidden lanes, which hit zero-padded w2 rows; padded w2 columns
    are sliced off after the kernel.
    """
    h_dim = w1.shape[1]
    d_out = w2.shape[1]
    h_pad = _round_up(h_dim, 128)
    d_out_pad = _round_up(d_out, 128)

    w1p = jnp.pad(w1, ((0, 0), (0, h_pad - h_dim))).astype(param_dtype)
    b1p = jnp.pad(b1.reshape(1, -1),
                  ((0, 0), (0, h_pad - h_dim))).astype(jnp.float32)
    w2p = jnp.pad(w2, ((0, h_pad - h_dim), (0, d_out_pad - d_out))
                  ).astype(param_dtype)
    b2p = jnp.pad(b2.reshape(1, -1),
                  ((0, 0), (0, d_out_pad - d_out))).astype(jnp.float32)
    return w1p, b1p, w2p, b2p


def _select_tiles(B, d_in, h_pad, d_out_pad, tm_max):
    """Pick (tm, tn) so resident weights + double-buffered x/out tiles + f32
    hidden temp fit the VMEM budget on every generation (v7x is the tightest)."""
    def est(tm, tn):
        # single-buffered resident weights/biases (per-TC slice of w2/b2)
        wts = d_in * h_pad * 2 + h_pad * tn * 2 + 8 * h_pad * 4 + 8 * tn * 4
        # double-buffered streamed x tile (f32) and out tile (f32)
        xio = 2 * tm * d_in * 4 + 2 * tm * tn * 4
        # f32 hidden temporary
        hid = tm * h_pad * 4
        return wts + xio + hid

    tm = max(8, min(_round_up(tm_max, 8), _round_up(B, 8)))
    tn = d_out_pad
    # Shrink the resident-w2 column tile before the batch tile: keeps the MXU
    # M dimension full and the number of grid steps low.
    while est(tm, tn) > _VMEM_BUDGET and tn > 128:
        tn = _round_up(tn // 2, 128)
    while est(tm, tn) > _VMEM_BUDGET and tm > 128:
        tm = _round_up(tm // 2, 8)
    # v7x has 2 TensorCores: if the batch grid has <2 tiles, split the output
    # columns so both cores get work (each only DMAs its half of w2/b2).
    # Neutral on single-TC v5e/v6e.
    if pl.cdiv(B, tm) < 2 and d_out_pad >= 256:
        tn = min(tn, _round_up(d_out_pad // 2, 128))
    return tm, tn, est(tm, tn)


@functools.partial(jax.jit, static_argnames=("d_out", "tm_max", "out_dtype"))
def answer_predictor(x, w1p, b1p, w2p, b2p, *, d_out, tm_max=512,
                     out_dtype=jnp.float32):
    """Fused MLP forward: relu(x @ w1 + b1) @ w2 + b2.

    x: (B, D_in) f32 (unpadded, uncast). w1p/b1p/w2p/b2p: outputs of
    prepare_params (padded to x128, weights bf16, biases f32).
    Set out_dtype=jnp.bfloat16 if the consumer accepts it (halves writeback).
    """
    B, d_in = x.shape
    h_pad = w1p.shape[1]
    d_out_pad = w2p.shape[1]

    tm, tn, vmem_est = _select_tiles(B, d_in, h_pad, d_out_pad, tm_max)
    grid = (pl.cdiv(B, tm), pl.cdiv(d_out_pad, tn))

    # Constant-index (resident) operands: one VMEM buffer is enough.
    resident = functools.partial(pl.BlockSpec, pipeline_mode=pl.Buffered(1))

    out = pl.pallas_call(
        _mlp_kernel,
        out_shape=jax.ShapeDtypeStruct((B, d_out_pad), out_dtype),
        grid=grid,
        in_specs=[
            pl.BlockSpec((tm, d_in), lambda i, j: (i, 0)),   # x  (streamed)
            resident((d_in, h_pad), lambda i, j: (0, 0)),    # w1 (resident)
            resident((1, h_pad), lambda i, j: (0, 0)),       # b1 (resident)
            resident((h_pad, tn), lambda i, j: (0, j)),      # w2 (resident/N-tiled)
            resident((1, tn), lambda i, j: (0, j)),          # b2 (resident/N-tiled)
        ],
        out_specs=pl.BlockSpec((tm, tn), lambda i, j: (i, j)),
        compiler_params=pltpu.CompilerParams(
            # Batch tiles and output-column tiles are independent.
            dimension_semantics=("parallel", "parallel"),
            # Raise the scoped VMEM limit past v5e's 16 MiB / v6e's 32 MiB
            # defaults when needed; budget already keeps us under v7x's 64 MiB.
            vmem_limit_bytes=int(min(100 * 1024 * 1024,
                                     max(32 * 1024 * 1024, 2 * vmem_est))),
        ),
    )(x, w1p, b1p, w2p, b2p)

    # Strip the output-lane padding (the batch dim was never padded).
    return out[:, :d_out] if d_out != d_out_pad else out


if __name__ == "__main__":
    # Small shapes consistent with the module's forward.
    batch, input_dim, hidden_dim, output_dim = 8, 32, 64, 16

    key = jax.random.PRNGKey(0)
    kx, kw1, kb1, kw2, kb2 = jax.random.split(key, 5)

    x = jax.random.normal(kx, (batch, input_dim), dtype=jnp.float32)

    # Deterministic parameter init (PyTorch-like uniform fan-in scaling).
    bound1 = 1.0 / (input_dim ** 0.5)
    w1 = jax.random.uniform(kw1, (input_dim, hidden_dim), jnp.float32,
                            -bound1, bound1)
    b1 = jax.random.uniform(kb1, (1, hidden_dim), jnp.float32,
                            -bound1, bound1)
    bound2 = 1.0 / (hidden_dim ** 0.5)
    w2 = jax.random.uniform(kw2, (hidden_dim, output_dim), jnp.float32,
                            -bound2, bound2)
    b2 = jax.random.uniform(kb2, (1, output_dim), jnp.float32,
                            -bound2, bound2)

    # One-time parameter prep (hoisted out of the per-call path).
    params = jax.block_until_ready(prepare_params(w1, b1, w2, b2))

    out = answer_predictor(x, *params, d_out=output_dim)
    out = jax.block_until_ready(out)

    # Pure-JAX f32 reference (tolerance relaxed for bf16 MXU operands with
    # f32 accumulation).
    ref = jnp.maximum(x @ w1 + b1, 0.0) @ w2 + b2
    assert out.shape == (batch, output_dim)
    assert jnp.allclose(out, ref, atol=2e-2, rtol=2e-2), (
        float(jnp.max(jnp.abs(out - ref))))

    print("KERNEL_OK")
</pallas_src>

<mosaic_0001>
module attributes {stable_mosaic.version = 11 : i64} {
  func.func @_mlp_kernel(%arg0: i32, %arg1: i32, %arg2: memref<8x32xf32, #tpu.memory_space<vmem>>, %arg3: memref<32x128xbf16, #tpu.memory_space<vmem>>, %arg4: memref<1x128xf32, #tpu.memory_space<vmem>>, %arg5: memref<128x128xbf16, #tpu.memory_space<vmem>>, %arg6: memref<1x128xf32, #tpu.memory_space<vmem>>, %arg7: memref<8x128xf32, #tpu.memory_space<vmem>>) attributes {dimension_semantics = [#tpu.dimension_semantics<parallel>, #tpu.dimension_semantics<parallel>], iteration_bounds = array<i64: 1, 1>, scalar_prefetch = 0 : i64, scratch_operands = 0 : i64, tpu.core_type = #tpu.core_type<tc>, window_params = [{transform_indices = @transform_0, window_bounds = array<i64: 8, 32>}, {pipeline_mode = #tpu.pipeline_mode<synchronous>, transform_indices = @transform_1, window_bounds = array<i64: 32, 128>}, {pipeline_mode = #tpu.pipeline_mode<synchronous>, transform_indices = @transform_2, window_bounds = array<i64: 1, 128>}, {pipeline_mode = #tpu.pipeline_mode<synchronous>, transform_indices = @transform_3, window_bounds = array<i64: 128, 128>}, {pipeline_mode = #tpu.pipeline_mode<synchronous>, transform_indices = @transform_4, window_bounds = array<i64: 1, 128>}, {transform_indices = @transform_5, window_bounds = array<i64: 8, 128>}]} {
    %c0 = arith.constant 0 : index
    %c0_0 = arith.constant 0 : index
    %0 = vector.load %arg2[%c0, %c0_0] : memref<8x32xf32, #tpu.memory_space<vmem>>, vector<8x32xf32>
    %1 = arith.truncf %0 : vector<8x32xf32> to vector<8x32xbf16>
    %c0_1 = arith.constant 0 : index
    %c0_2 = arith.constant 0 : index
    %2 = vector.load %arg3[%c0_1, %c0_2] : memref<32x128xbf16, #tpu.memory_space<vmem>>, vector<32x128xbf16>
    %cst = arith.constant dense<0.000000e+00> : vector<8x128xf32>
    %3 = tpu.matmul %1, %2, %cst {dimension_numbers = #tpu.dot_dimension_numbers<[1], [0], [0], [1], [0, 0, 1, 1], [], []>} : vector<8x32xbf16>, vector<32x128xbf16>, vector<8x128xf32> -> vector<8x128xf32>
    %c0_3 = arith.constant 0 : index
    %c0_4 = arith.constant 0 : index
    %4 = vector.load %arg4[%c0_3, %c0_4] : memref<1x128xf32, #tpu.memory_space<vmem>>, vector<1x128xf32>
    %5 = vector.broadcast %4 : vector<1x128xf32> to vector<8x128xf32>
    %6 = arith.addf %3, %5 : vector<8x128xf32>
    %cst_5 = arith.constant 0.000000e+00 : f32
    %7 = vector.broadcast %cst_5 : f32 to vector<8x128xf32>
    %8 = arith.maximumf %6, %7 : vector<8x128xf32>
    %9 = arith.truncf %8 : vector<8x128xf32> to vector<8x128xbf16>
    %c0_6 = arith.constant 0 : index
    %c0_7 = arith.constant 0 : index
    %10 = vector.load %arg5[%c0_6, %c0_7] : memref<128x128xbf16, #tpu.memory_space<vmem>>, vector<128x128xbf16>
    %cst_8 = arith.constant dense<0.000000e+00> : vector<8x128xf32>
    %11 = tpu.matmul %9, %10, %cst_8 {dimension_numbers = #tpu.dot_dimension_numbers<[1], [0], [0], [1], [0, 0, 1, 1], [], []>} : vector<8x128xbf16>, vector<128x128xbf16>, vector<8x128xf32> -> vector<8x128xf32>
    %c0_9 = arith.constant 0 : index
    %c0_10 = arith.constant 0 : index
    %12 = vector.load %arg6[%c0_9, %c0_10] : memref<1x128xf32, #tpu.memory_space<vmem>>, vector<1x128xf32>
    %13 = vector.broadcast %12 : vector<1x128xf32> to vector<8x128xf32>
    %14 = arith.addf %11, %13 : vector<8x128xf32>
    %c0_11 = arith.constant 0 : index
    %c0_12 = arith.constant 0 : index
    %15 = vector.load %arg7[%c0_11, %c0_12] : memref<8x128xf32, #tpu.memory_space<vmem>>, vector<8x128xf32>
    tpu.vector_store %arg7[%c0_11, %c0_12], %14 {strides = array<i32>} : memref<8x128xf32, #tpu.memory_space<vmem>>, vector<8x128xf32>,
    return
  }
  func.func @transform_0(%arg0: i32, %arg1: i32) -> (i32, i32) {
    %c0_i32 = arith.constant 0 : i32
    %c0_i32_0 = arith.constant 0 : i32
    return %arg0, %c0_i32 : i32, i32
  }
  func.func @transform_1(%arg0: i32, %arg1: i32) -> (i32, i32) {
    %c0_i32 = arith.constant 0 : i32
    %c0_i32_0 = arith.constant 0 : i32
    %c0_i32_1 = arith.constant 0 : i32
    return %c0_i32, %c0_i32_0 : i32, i32
  }
  func.func @transform_2(%arg0: i32, %arg1: i32) -> (i32, i32) {
    %c0_i32 = arith.constant 0 : i32
    %c0_i32_0 = arith.constant 0 : i32
    %c0_i32_1 = arith.constant 0 : i32
    return %c0_i32, %c0_i32_0 : i32, i32
  }
  func.func @transform_3(%arg0: i32, %arg1: i32) -> (i32, i32) {
    %c0_i32 = arith.constant 0 : i32
    %c0_i32_0 = arith.constant 0 : i32
    return %c0_i32, %arg1 : i32, i32
  }
  func.func @transform_4(%arg0: i32, %arg1: i32) -> (i32, i32) {
    %c0_i32 = arith.constant 0 : i32
    %c0_i32_0 = arith.constant 0 : i32
    return %c0_i32, %arg1 : i32, i32
  }
  func.func @transform_5(%arg0: i32, %arg1: i32) -> (i32, i32) {
    %c0_i32 = arith.constant 0 : i32
    return %arg0, %arg1 : i32, i32
  }
}

</mosaic_0001>

<bundles_post_ra>
// kernel: answer_predictor.1
= control target key start
LH: loop header
LB: loop body
LE: loop exit
PB: predicated region body
PF: predicated region fallthrough
CT: control target
= control target key end

     0   :  { %10 = vsyncpa [#allocation3], 0  ;;  %s423_s0 = inlined_call_operand.hbm [shape: f32[8,32], index: 0, kind: input, shape index: {}]   ;;  %s424_s1 = inlined_call_operand.hbm [shape: bf16[32,128], index: 1, kind: input, shape index: {}]   ;;  %s425_s2 = inlined_call_operand.vmem [shape: f32[1,128], index: 2, kind: input, shape index: {}]   ;;  %s426_s3 = inlined_call_operand.hbm [shape: bf16[128,128], index: 3, kind: input, shape index: {}]   ;;  %s427_s4 = inlined_call_operand.vmem [shape: f32[1,128], index: 4, kind: input, shape index: {}]   ;;  %s428_s5 = inlined_call_operand.hbm [shape: f32[8,128], index: 5, kind: output, shape index: {}]  }
   0x1   :  { %11 = vsyncpa [#allocation6], 0  ;;  %s28_s20 = sshll.u32 %s424_s1, 4  ;;  %s29_s20 = int_to_ptr.hbm [resolvable:$true] %s28_s20 }
   0x2   :  { %12 = vsyncpa [#allocation4], 0  ;;  %s369_s21 = smov [#allocation5]   ;;  %s18_s25 = sshll.u32 %s423_s0, 4  ;;  %s19_s25 = int_to_ptr.hbm [resolvable:$true] %s18_s25 }
   0x3   :  { %s30_s22 = sshll.u32 %s369_s21, 4  ;;  %s370_s26 = smov 64   ;;  %s31_s22 = int_to_ptr.vmem [resolvable:$true] %s30_s22 }
   0x4   :  { %s371_s27 = smov 4   ;;  %s372_s28 = smov [#allocation2]  }
   0x5   :  { %36 = dma.hbm_to_vmem [thread:$0]  %s29_s20, 256, %s31_s22, [#allocation6], %s370_s26, %s370_s26, %s371_s27  }
   0x6   :  { %s20_s29 = sshll.u32 %s372_s28, 4  ;;  %s43_s7 = sshll.u32 %s426_s3, 4  ;;  %s21_s29 = int_to_ptr.vmem [resolvable:$true] %s20_s29  ;;  %s44_s7 = int_to_ptr.hbm [resolvable:$true] %s43_s7 }
   0x7   :  { %23 = dma.hbm_to_vmem [thread:$0]  %s19_s25, 128, %s21_s29, [#allocation3]  }
   0x8   :  { %s373_s1 = smov [#allocation7]  }
   0x9   :  { %s45_s8 = sshll.u32 %s373_s1, 4  ;;  %s46_s8 = int_to_ptr.vmem [resolvable:$true] %s45_s8 }
   0xa   :  { %51 = dma.hbm_to_vmem [thread:$0]  %s44_s7, 1024, %s46_s8, [#allocation6], %s370_s26, %s370_s26, %s371_s27  }
   0xb   :  { %363 = dma.done.wait [#allocation3], 128  }
   0xc   :  { %364 = vsyncadd [#allocation3], 4294967168 }
   0xd   :  { %365 = dma.done.wait [#allocation6], 1280  }
   0xe   :  { %366 = vsyncadd [#allocation6], 4294966016  ;;  %v250_v0 = vld [vmem:[#allocation5 + $0x8] sm:$0xff]  ;;  %v249_v2 = vld [vmem:[#allocation5] sm:$0xff]  ;;  %vm89_vm0 = vcmask 261120   ;;  %s374_s11 = smov [#allocation8]  }
   0xf   :  { %v258_v1 = vld [vmem:[#allocation7 + $0x38] sm:$0xff]  ;;  %99 = vmatpush.bf16.msra.mxu0 %v250_v0  ;;  %v67_v3 = vld [vmem:[#allocation2] sm:$0xff]  ;;  %v257_v4 = vld [vmem:[#allocation7 + $0x30] sm:$0xff]  ;;  %s195_s12 = sshll.u32 %s374_s11, 4  ;;  %s197_s15 = sshll.u32 %s428_s5, 4  ;;  %s196_s12 = int_to_ptr.vmem [resolvable:$true] %s195_s12  ;;  %s198_s15 = int_to_ptr.hbm [resolvable:$true] %s197_s15 }
  0x10   :  { %176 = vmatpush.bf16.msra.mxu1 %v258_v1  ;;  %v68_v5 = vpack.c.bf16 %v67_v3, %v67_v3  ;;  %v256_v6 = vld [vmem:[#allocation7 + $0x28] sm:$0xff]  ;;  %v255_v7 = vld [vmem:[#allocation7 + $0x20] sm:$0xff]  ;;  %v254_v8 = vld [vmem:[#allocation7 + $0x18] sm:$0xff] }
  0x11   :  { %v253_v9 = vld [vmem:[#allocation7 + $0x10] sm:$0xff]  ;;  %v252_v10 = vld [vmem:[#allocation7 + $0x8] sm:$0xff]  ;;  %v251_v11 = vld [vmem:[#allocation7] sm:$0xff] }
  0x12   :  { %v265_v12 = vld [vmem:[%s425_s2] ss:$0 sm:$0xff] }
  0x13   :  { %100 = vmatpush.bf16.msra.mxu0 %v249_v2  ;;  %v266_v18 = vld [vmem:[%s427_s4] ss:$0 sm:$0xff] }
  0x14   :  { %177 = vmatpush.bf16.msra.mxu1 %v257_v4 }
  0x16   :  { %216 = vmatmul.msk.bf16.vlgmr.msra.gmra.mxu0 %vm89_vm0, %v68_v5 }
  0x18   :  { %178 = vmatpush.bf16.msra.mxu1 %v256_v6 }
  0x1c   :  { %179 = vmatpush.bf16.msra.mxu1 %v255_v7 }
  0x20   :  { %180 = vmatpush.bf16.msra.mxu1 %v254_v8 }
  0x24   :  { %181 = vmatpush.bf16.msra.mxu1 %v253_v9 }
  0x28   :  { %182 = vmatpush.bf16.msra.mxu1 %v252_v10 }
  0x2c   :  { %183 = vmatpush.bf16.msra.mxu1 %v251_v11 }
  0x93   :  { %v102_v13 = vpop.f32.mrf.mxu0 }
  0x94   :  { %v103_v14 = vadd.f32 %v265_v12, %v102_v13 }
  0x96   :  { %v106_v15 = vmax.f32 %v103_v14, 0.0 }
  0x98   :  { %v107_v16 = vpack.c.bf16 %v106_v15, %v106_v15 }
  0x9a   :  { %184 = vmatmul.bf16.vlgmr.msra.gmra.mxu1 %v107_v16 }
  0x9b   :  { %v104_v17 = vpop.f32.mrf.mxu0 }
 0x117   :  { %v185_v19 = vpop.f32.mrf.mxu1 }
 0x118   :  { %v186_v20 = vadd.f32 %v266_v18, %v185_v19 }
 0x11a   :  { %189 = vst [vmem:[#allocation8] sm:$0xff] %v186_v20 }
 0x11b   :  { %200 = dma.vmem_to_hbm [thread:$0]  %s196_s12, 128, %s198_s15, [#allocation4]  }
 0x11f   :  { %v187_v21 = vpop.f32.mrf.mxu1 }
 0x120   :  { %367 = dma.done.wait [#allocation4], 128  }
 0x121   :  { %368 = vsyncadd [#allocation4], 4294967168 }
 0x122   :  { %205 = vsyncpa [#allocation3], 1 }
 0x123   :  { %206 = vsyncpa [#allocation6], 1 }
 0x124   :  { %207 = vsyncpa [#allocation4], 1 }

</bundles_post_ra>
